<compile_context>
chip_gen: v5e
topology: v5e:2x2
jax: 0.10.0
libtpu: 0.0.40
codegen_flags: <defaults>
</compile_context>

<pallas_src>
import functools

import jax
import jax.numpy as jnp
from jax import lax
from jax.experimental import pallas as pl
from jax.experimental.pallas import tpu as pltpu

HIDDEN = 768       # RoBERTa-base hidden size (required by Linear(768, 64))
D_MID = 64
N_OUT = 2
N_OUT_PAD = 128    # lane-dense logits width; real logits are the first N_OUT cols
LN_EPS = 1e-5


def _head_kernel(hs_ref, w1s_ref, b1_ref, g_ref, beta_ref, w2_ref, b2_ref,
                 out_ref, acc_ref, *, block_s, chunk_s):
    s_idx = pl.program_id(1)

    @pl.when(s_idx == 0)
    def _init():
        acc_ref[...] = jnp.zeros_like(acc_ref)

    # Chunked sequence reduction: cast at most (TB, chunk_s, H) of the
    # native-dtype tile to f32 at a time and fold it into the f32 accumulator,
    # so no full-tile f32 intermediate is ever materialized.
    n_chunks = block_s // chunk_s

    def _accum(k, carry):
        start = pl.multiple_of(k * chunk_s, chunk_s)
        chunk = hs_ref[:, pl.ds(start, chunk_s), :].astype(jnp.float32)
        acc_ref[...] += jnp.sum(chunk, axis=1)            # [TB, H]
        return carry

    lax.fori_loop(0, n_chunks, _accum, 0, unroll=True)

    @pl.when(s_idx == pl.num_programs(1) - 1)
    def _finalize():
        # d1: dropout -> identity (eval)

        # l1: Linear(768 -> 64).  The mean-pool's 1/S is pre-folded into w1s,
        # so the sequence *sum* feeds the MXU directly:
        #   acc @ (w1 / S) == mean(hs, axis=1) @ w1
        x = jnp.dot(acc_ref[...], w1s_ref[...],
                    preferred_element_type=jnp.float32) + b1_ref[...]  # [TB, 64]

        # bn1: LayerNorm(64) (biased variance, eps inside rsqrt, affine)
        mu = jnp.mean(x, axis=-1, keepdims=True)
        var = jnp.mean((x - mu) * (x - mu), axis=-1, keepdims=True)
        x = (x - mu) * lax.rsqrt(var + LN_EPS)
        x = x * g_ref[...] + beta_ref[...]

        # tanh
        x = jnp.tanh(x)

        # d2: dropout -> identity (eval)

        # l2: Linear(64 -> n_outputs), padded to 128 lanes for a dense store.
        out_ref[...] = jnp.dot(x, w2_ref[...],
                               preferred_element_type=jnp.float32) + b2_ref[...]


def _pick_tile(total, target, align):
    """Largest divisor of `total` that is <= target and a multiple of `align`;
    falls back to the whole axis (always legal for a BlockSpec)."""
    if total <= target:
        return total
    t = (min(target, total) // align) * align
    while t >= align:
        if total % t == 0:
            return t
        t -= align
    return total


def _pick_chunk(block_s, target=64):
    """Largest divisor of block_s that is <= target and a multiple of 8;
    falls back to block_s (single chunk)."""
    if block_s <= target:
        return block_s
    c = (target // 8) * 8
    while c >= 8:
        if block_s % c == 0:
            return c
        c -= 8
    return block_s


def sroberta_classifier_head(hidden_states, w1, b1, ln_gamma, ln_beta, w2, b2,
                             *, block_b=None, block_s=None,
                             vmem_budget_per_buffer=12 * 1024 * 1024):
    """hidden_states: [B, S, 768] (any float dtype) -> logits [B, N_OUT] f32.

    hidden_states are streamed in their native dtype (no wrapper-side cast:
    that would add a full extra HBM pass on the only large operand).  If the
    upstream encoder already emits bf16, HBM traffic is halved for free.
    """
    B, S, H = hidden_states.shape
    assert H == HIDDEN

    itemsize = jnp.dtype(hidden_states.dtype).itemsize

    # Tile sizing: ~12 MiB per hs pipeline buffer -> 2 buffers + resident
    # weights + scratch stay well under the 48 MiB explicit VMEM limit below
    # (safe on v7x's 64 MiB physical VMEM; amply inside v5e/v6e's 128 MiB).
    if block_b is None:
        block_b = _pick_tile(B, 8, 8)
    if block_s is None:
        target_s = max(8, vmem_budget_per_buffer // (block_b * HIDDEN * itemsize))
        block_s = _pick_tile(S, target_s, 8)
    chunk_s = _pick_chunk(block_s)
    grid = (B // block_b, S // block_s)

    # Lane-friendly parameter shapes: fold 1/S into w1, 1-D params -> (1, D),
    # pad logits weight/bias to 128 output columns for an unmasked dense store.
    w1s = w1.astype(jnp.float32) * jnp.float32(1.0 / S)
    b1_r = b1.astype(jnp.float32).reshape(1, D_MID)
    g_r = ln_gamma.astype(jnp.float32).reshape(1, D_MID)
    beta_r = ln_beta.astype(jnp.float32).reshape(1, D_MID)
    w2_p = jnp.zeros((D_MID, N_OUT_PAD), jnp.float32).at[:, :N_OUT].set(
        w2.astype(jnp.float32))
    b2_p = jnp.zeros((1, N_OUT_PAD), jnp.float32).at[0, :N_OUT].set(
        b2.astype(jnp.float32))

    const = lambda b, s: (0, 0)

    cost = pl.CostEstimate(
        flops=(B * S * HIDDEN                       # pooling adds
               + 2 * B * HIDDEN * D_MID             # l1
               + 2 * B * D_MID * N_OUT_PAD          # l2 (padded)
               + 8 * B * D_MID),                    # layernorm-ish
        transcendentals=B * D_MID + B,              # tanh + rsqrt
        bytes_accessed=(B * S * HIDDEN * itemsize
                        + (HIDDEN * D_MID + D_MID * N_OUT_PAD + 4 * D_MID) * 4
                        + B * N_OUT_PAD * 4),
    )

    out_padded = pl.pallas_call(
        functools.partial(_head_kernel, block_s=block_s, chunk_s=chunk_s),
        out_shape=jax.ShapeDtypeStruct((B, N_OUT_PAD), jnp.float32),
        grid_spec=pltpu.PrefetchScalarGridSpec(
            num_scalar_prefetch=0,
            grid=grid,
            in_specs=[
                # Streamed, double-buffered hidden_states tiles (native dtype).
                pl.BlockSpec((block_b, block_s, HIDDEN), lambda b, s: (b, s, 0)),
                # Weights / params: constant index_map -> stay VMEM-resident.
                pl.BlockSpec((HIDDEN, D_MID), const),      # w1 (pre-scaled by 1/S)
                pl.BlockSpec((1, D_MID), const),           # b1
                pl.BlockSpec((1, D_MID), const),           # ln gamma
                pl.BlockSpec((1, D_MID), const),           # ln beta
                pl.BlockSpec((D_MID, N_OUT_PAD), const),   # w2 (padded)
                pl.BlockSpec((1, N_OUT_PAD), const),       # b2 (padded)
            ],
            out_specs=pl.BlockSpec((block_b, N_OUT_PAD), lambda b, s: (b, 0)),
            scratch_shapes=[pltpu.VMEM((block_b, HIDDEN), jnp.float32)],
        ),
        compiler_params=pltpu.CompilerParams(
            # batch tiles independent (megacore-shardable); sequence chunks are
            # a reduction -> "arbitrary", placed last.
            dimension_semantics=("parallel", "arbitrary"),
            # Explicit scoped-VMEM limit: 2 x ~12 MiB hs buffers + weights +
            # scratch need > v5e's 16 MiB default; 48 MiB is safe on v5e/v6e
            # (128 MiB physical) and v7x (64 MiB physical).
            vmem_limit_bytes=48 * 1024 * 1024,
        ),
        cost_estimate=cost,
    )(hidden_states, w1s, b1_r, g_r, beta_r, w2_p, b2_p)

    return out_padded[:, :N_OUT]


def init_params(key):
    k1, k2, k3, k4 = jax.random.split(key, 4)
    # torch.nn.Linear default init: U(-1/sqrt(fan_in), 1/sqrt(fan_in))
    lim1 = 1.0 / (HIDDEN ** 0.5)
    lim2 = 1.0 / (D_MID ** 0.5)
    w1 = jax.random.uniform(k1, (HIDDEN, D_MID), jnp.float32, -lim1, lim1)
    b1 = jax.random.uniform(k2, (D_MID,), jnp.float32, -lim1, lim1)
    w2 = jax.random.uniform(k3, (D_MID, N_OUT), jnp.float32, -lim2, lim2)
    b2 = jax.random.uniform(k4, (N_OUT,), jnp.float32, -lim2, lim2)
    # LayerNorm default: gamma=1, beta=0
    ln_gamma = jnp.ones((D_MID,), jnp.float32)
    ln_beta = jnp.zeros((D_MID,), jnp.float32)
    return w1, b1, ln_gamma, ln_beta, w2, b2


if __name__ == "__main__":
    key = jax.random.PRNGKey(0)
    k_hs, k_params = jax.random.split(key)

    B, S = 2, 8
    # Stand-in for the pretrained encoder's hidden_states output [B, S, 768].
    hidden_states = jax.random.normal(k_hs, (B, S, HIDDEN), jnp.float32)

    params = init_params(k_params)

    logits = sroberta_classifier_head(hidden_states, *params)
    logits = jax.block_until_ready(logits)

    assert logits.shape == (B, N_OUT)
    assert logits.dtype == jnp.float32
    print("KERNEL_OK")
</pallas_src>

<mosaic_0001>
module attributes {stable_mosaic.version = 11 : i64} {
  func.func @_head_kernel(%arg0: i32, %arg1: i32, %arg2: memref<2x8x768xf32, #tpu.memory_space<vmem>>, %arg3: memref<768x64xf32, #tpu.memory_space<vmem>>, %arg4: memref<1x64xf32, #tpu.memory_space<vmem>>, %arg5: memref<1x64xf32, #tpu.memory_space<vmem>>, %arg6: memref<1x64xf32, #tpu.memory_space<vmem>>, %arg7: memref<64x128xf32, #tpu.memory_space<vmem>>, %arg8: memref<1x128xf32, #tpu.memory_space<vmem>>, %arg9: memref<2x128xf32, #tpu.memory_space<vmem>>, %arg10: memref<2x768xf32, #tpu.memory_space<vmem>>) attributes {dimension_semantics = [#tpu.dimension_semantics<parallel>, #tpu.dimension_semantics<arbitrary>], iteration_bounds = array<i64: 1, 1>, scalar_prefetch = 0 : i64, scratch_operands = 1 : i64, tpu.core_type = #tpu.core_type<tc>, window_params = [{transform_indices = @transform_0, window_bounds = array<i64: 2, 8, 768>}, {pipeline_mode = #tpu.pipeline_mode<synchronous>, transform_indices = @transform_1, window_bounds = array<i64: 768, 64>}, {pipeline_mode = #tpu.pipeline_mode<synchronous>, transform_indices = @transform_2, window_bounds = array<i64: 1, 64>}, {pipeline_mode = #tpu.pipeline_mode<synchronous>, transform_indices = @transform_3, window_bounds = array<i64: 1, 64>}, {pipeline_mode = #tpu.pipeline_mode<synchronous>, transform_indices = @transform_4, window_bounds = array<i64: 1, 64>}, {pipeline_mode = #tpu.pipeline_mode<synchronous>, transform_indices = @transform_5, window_bounds = array<i64: 64, 128>}, {pipeline_mode = #tpu.pipeline_mode<synchronous>, transform_indices = @transform_6, window_bounds = array<i64: 1, 128>}, {transform_indices = @transform_7, window_bounds = array<i64: 2, 128>}]} {
    %c0_i32 = arith.constant 0 : i32
    %0 = arith.cmpi eq, %arg1, %c0_i32 : i32
    %1 = arith.extui %0 : i1 to i32
    %c0_i32_0 = arith.constant 0 : i32
    %2 = arith.cmpi ne, %1, %c0_i32_0 : i32
    scf.if %2 {
      %cst_9 = arith.constant 0.000000e+00 : f32
      %14 = vector.broadcast %cst_9 : f32 to vector<2x768xf32>
      %c0_10 = arith.constant 0 : index
      %c0_11 = arith.constant 0 : index
      %15 = vector.load %arg10[%c0_10, %c0_11] : memref<2x768xf32, #tpu.memory_space<vmem>>, vector<2x768xf32>
      tpu.vector_store %arg10[%c0_10, %c0_11], %14 {strides = array<i32>} : memref<2x768xf32, #tpu.memory_space<vmem>>, vector<2x768xf32>,
    } else {
    }
    %c0_i32_1 = arith.constant 0 : i32
    %c8_i32 = arith.constant 8 : i32
    %3 = arith.muli %c0_i32_1, %c8_i32 : i32
    %4 = tpu.assume_multiple %3, 8 : i32
    %c0 = arith.constant 0 : index
    %5 = arith.index_cast %4 : i32 to index
    %c0_2 = arith.constant 0 : index
    %6 = vector.load %arg2[%c0, %5, %c0_2] : memref<2x8x768xf32, #tpu.memory_space<vmem>>, vector<2x8x768xf32>
    %c0_3 = arith.constant 0 : index
    %c0_4 = arith.constant 0 : index
    %7 = vector.load %arg10[%c0_3, %c0_4] : memref<2x768xf32, #tpu.memory_space<vmem>>, vector<2x768xf32>
    %cst = arith.constant dense<0.000000e+00> : vector<2x768xf32>
    %8 = vector.multi_reduction <add>, %6, %cst [1] : vector<2x8x768xf32> to vector<2x768xf32>
    %9 = arith.addf %7, %8 : vector<2x768xf32>
    %c0_5 = arith.constant 0 : index
    %c0_6 = arith.constant 0 : index
    %10 = vector.load %arg10[%c0_5, %c0_6] : memref<2x768xf32, #tpu.memory_space<vmem>>, vector<2x768xf32>
    tpu.vector_store %arg10[%c0_5, %c0_6], %9 {strides = array<i32>} : memref<2x768xf32, #tpu.memory_space<vmem>>, vector<2x768xf32>,
    %c1_i32 = arith.constant 1 : i32
    %c0_i32_7 = arith.constant 0 : i32
    %11 = arith.cmpi eq, %arg1, %c0_i32_7 : i32
    %12 = arith.extui %11 : i1 to i32
    %c0_i32_8 = arith.constant 0 : i32
    %13 = arith.cmpi ne, %12, %c0_i32_8 : i32
    scf.if %13 {
      %c0_9 = arith.constant 0 : index
      %c0_10 = arith.constant 0 : index
      %14 = vector.load %arg10[%c0_9, %c0_10] : memref<2x768xf32, #tpu.memory_space<vmem>>, vector<2x768xf32>
      %c0_11 = arith.constant 0 : index
      %c0_12 = arith.constant 0 : index
      %15 = vector.load %arg3[%c0_11, %c0_12] : memref<768x64xf32, #tpu.memory_space<vmem>>, vector<768x64xf32>
      %cst_13 = arith.constant dense<0.000000e+00> : vector<2x64xf32>
      %16 = tpu.matmul %14, %15, %cst_13 {dimension_numbers = #tpu.dot_dimension_numbers<[1], [0], [0], [1], [0, 0, 1, 1], [], []>} : vector<2x768xf32>, vector<768x64xf32>, vector<2x64xf32> -> vector<2x64xf32>
      %c0_14 = arith.constant 0 : index
      %c0_15 = arith.constant 0 : index
      %17 = vector.load %arg4[%c0_14, %c0_15] : memref<1x64xf32, #tpu.memory_space<vmem>>, vector<1x64xf32>
      %18 = vector.broadcast %17 : vector<1x64xf32> to vector<2x64xf32>
      %19 = arith.addf %16, %18 : vector<2x64xf32>
      %cst_16 = arith.constant dense<0.000000e+00> : vector<2xf32>
      %20 = vector.multi_reduction <add>, %19, %cst_16 [1] : vector<2x64xf32> to vector<2xf32>
      %21 = vector.shape_cast %20 : vector<2xf32> to vector<2x1xf32>
      %cst_17 = arith.constant 6.400000e+01 : f32
      %22 = vector.broadcast %cst_17 : f32 to vector<2x1xf32>
      %23 = arith.divf %21, %22 : vector<2x1xf32>
      %24 = vector.broadcast %23 : vector<2x1xf32> to vector<2x64xf32>
      %25 = arith.subf %19, %24 : vector<2x64xf32>
      %26 = vector.broadcast %23 : vector<2x1xf32> to vector<2x64xf32>
      %27 = arith.subf %19, %26 : vector<2x64xf32>
      %28 = arith.mulf %25, %27 : vector<2x64xf32>
      %cst_18 = arith.constant dense<0.000000e+00> : vector<2xf32>
      %29 = vector.multi_reduction <add>, %28, %cst_18 [1] : vector<2x64xf32> to vector<2xf32>
      %30 = vector.shape_cast %29 : vector<2xf32> to vector<2x1xf32>
      %cst_19 = arith.constant 6.400000e+01 : f32
      %31 = vector.broadcast %cst_19 : f32 to vector<2x1xf32>
      %32 = arith.divf %30, %31 : vector<2x1xf32>
      %33 = vector.broadcast %23 : vector<2x1xf32> to vector<2x64xf32>
      %34 = arith.subf %19, %33 : vector<2x64xf32>
      %cst_20 = arith.constant 9.99999974E-6 : f32
      %35 = vector.broadcast %cst_20 : f32 to vector<2x1xf32>
      %36 = arith.addf %32, %35 : vector<2x1xf32>
      %37 = math.rsqrt %36 : vector<2x1xf32>
      %38 = vector.broadcast %37 : vector<2x1xf32> to vector<2x64xf32>
      %39 = arith.mulf %34, %38 : vector<2x64xf32>
      %c0_21 = arith.constant 0 : index
      %c0_22 = arith.constant 0 : index
      %40 = vector.load %arg5[%c0_21, %c0_22] : memref<1x64xf32, #tpu.memory_space<vmem>>, vector<1x64xf32>
      %41 = vector.broadcast %40 : vector<1x64xf32> to vector<2x64xf32>
      %42 = arith.mulf %39, %41 : vector<2x64xf32>
      %c0_23 = arith.constant 0 : index
      %c0_24 = arith.constant 0 : index
      %43 = vector.load %arg6[%c0_23, %c0_24] : memref<1x64xf32, #tpu.memory_space<vmem>>, vector<1x64xf32>
      %44 = vector.broadcast %43 : vector<1x64xf32> to vector<2x64xf32>
      %45 = arith.addf %42, %44 : vector<2x64xf32>
      %46 = math.tanh %45 : vector<2x64xf32>
      %c0_25 = arith.constant 0 : index
      %c0_26 = arith.constant 0 : index
      %47 = vector.load %arg7[%c0_25, %c0_26] : memref<64x128xf32, #tpu.memory_space<vmem>>, vector<64x128xf32>
      %cst_27 = arith.constant dense<0.000000e+00> : vector<2x128xf32>
      %48 = tpu.matmul %46, %47, %cst_27 {dimension_numbers = #tpu.dot_dimension_numbers<[1], [0], [0], [1], [0, 0, 1, 1], [], []>} : vector<2x64xf32>, vector<64x128xf32>, vector<2x128xf32> -> vector<2x128xf32>
      %c0_28 = arith.constant 0 : index
      %c0_29 = arith.constant 0 : index
      %49 = vector.load %arg8[%c0_28, %c0_29] : memref<1x128xf32, #tpu.memory_space<vmem>>, vector<1x128xf32>
      %50 = vector.broadcast %49 : vector<1x128xf32> to vector<2x128xf32>
      %51 = arith.addf %48, %50 : vector<2x128xf32>
      %c0_30 = arith.constant 0 : index
      %c0_31 = arith.constant 0 : index
      %52 = vector.load %arg9[%c0_30, %c0_31] : memref<2x128xf32, #tpu.memory_space<vmem>>, vector<2x128xf32>
      tpu.vector_store %arg9[%c0_30, %c0_31], %51 {strides = array<i32>} : memref<2x128xf32, #tpu.memory_space<vmem>>, vector<2x128xf32>,
    } else {
    }
    return
  }
  func.func @transform_0(%arg0: i32, %arg1: i32) -> (i32, i32, i32) {
    %c0_i32 = arith.constant 0 : i32
    %c0_i32_0 = arith.constant 0 : i32
    return %arg0, %arg1, %c0_i32 : i32, i32, i32
  }
  func.func @transform_1(%arg0: i32, %arg1: i32) -> (i32, i32) {
    %c0_i32 = arith.constant 0 : i32
    %c0_i32_0 = arith.constant 0 : i32
    %c0_i32_1 = arith.constant 0 : i32
    return %c0_i32, %c0_i32_0 : i32, i32
  }
  func.func @transform_2(%arg0: i32, %arg1: i32) -> (i32, i32) {
    %c0_i32 = arith.constant 0 : i32
    %c0_i32_0 = arith.constant 0 : i32
    %c0_i32_1 = arith.constant 0 : i32
    return %c0_i32, %c0_i32_0 : i32, i32
  }
  func.func @transform_3(%arg0: i32, %arg1: i32) -> (i32, i32) {
    %c0_i32 = arith.constant 0 : i32
    %c0_i32_0 = arith.constant 0 : i32
    %c0_i32_1 = arith.constant 0 : i32
    return %c0_i32, %c0_i32_0 : i32, i32
  }
  func.func @transform_4(%arg0: i32, %arg1: i32) -> (i32, i32) {
    %c0_i32 = arith.constant 0 : i32
    %c0_i32_0 = arith.constant 0 : i32
    %c0_i32_1 = arith.constant 0 : i32
    return %c0_i32, %c0_i32_0 : i32, i32
  }
  func.func @transform_5(%arg0: i32, %arg1: i32) -> (i32, i32) {
    %c0_i32 = arith.constant 0 : i32
    %c0_i32_0 = arith.constant 0 : i32
    %c0_i32_1 = arith.constant 0 : i32
    return %c0_i32, %c0_i32_0 : i32, i32
  }
  func.func @transform_6(%arg0: i32, %arg1: i32) -> (i32, i32) {
    %c0_i32 = arith.constant 0 : i32
    %c0_i32_0 = arith.constant 0 : i32
    %c0_i32_1 = arith.constant 0 : i32
    return %c0_i32, %c0_i32_0 : i32, i32
  }
  func.func @transform_7(%arg0: i32, %arg1: i32) -> (i32, i32) {
    %c0_i32 = arith.constant 0 : i32
    %c0_i32_0 = arith.constant 0 : i32
    return %arg0, %c0_i32 : i32, i32
  }
}

</mosaic_0001>

<bundles_post_ra>
// kernel: tpu_custom_call.1
= control target key start
LH: loop header
LB: loop body
LE: loop exit
PB: predicated region body
PF: predicated region fallthrough
CT: control target
= control target key end

     0   :  { %v555_v8 = vmov 0.0   ;;  %vm142_vm0 = vcmask 1041408   ;;  %vm144_vm1 = vcmask 1045508   ;;  %vm146_vm2 = vcmask 1043456   ;;  %s979_s0 = inlined_call_operand.vmem [shape: f32[2,8,768], index: 0, kind: input, shape index: {}]   ;;  %s980_s1 = inlined_call_operand.vmem [shape: f32[768,64], index: 1, kind: input, shape index: {}]   ;;  %s981_s2 = inlined_call_operand.vmem [shape: f32[1,64], index: 2, kind: input, shape index: {}]   ;;  %s982_s3 = inlined_call_operand.vmem [shape: f32[1,64], index: 3, kind: input, shape index: {}]   ;;  %s983_s4 = inlined_call_operand.vmem [shape: f32[1,64], index: 4, kind: input, shape index: {}]   ;;  %s984_s5 = inlined_call_operand.vmem [shape: f32[64,128], index: 5, kind: input, shape index: {}]   ;;  %s985_s6 = inlined_call_operand.vmem [shape: f32[1,128], index: 6, kind: input, shape index: {}]   ;;  %s986_s7 = inlined_call_operand.hbm [shape: f32[2,128], index: 7, kind: output, shape index: {}]  }
   0x1   :  { %v199_v0 = vld [vmem:[%s980_s1 + $0x78] sm:$0xff]  ;;  %v198_v1 = vld [vmem:[%s980_s1 + $0x70] sm:$0xff]  ;;  %v197_v4 = vld [vmem:[%s980_s1 + $0x68] sm:$0xff]  ;;  %32 = vst [vmem:[#allocation2 + $0x8] sm:$0xf] %v555_v8 }
   0x2   :  { %v215_v2 = vld [vmem:[%s980_s1 + $0xf8] sm:$0xff]  ;;  %301 = vmatpush.msra.mxu0 %v199_v0  ;;  %v214_v3 = vld [vmem:[%s980_s1 + $0xf0] sm:$0xff]  ;;  %v213_v5 = vld [vmem:[%s980_s1 + $0xe8] sm:$0xff] }
   0x3   :  { %321 = vmatpush.msra.mxu1 %v215_v2  ;;  %v196_v6 = vld [vmem:[%s980_s1 + $0x60] sm:$0xff]  ;;  %v195_v9 = vld [vmem:[%s980_s1 + $0x58] sm:$0xff]  ;;  %v194_v11 = vld [vmem:[%s980_s1 + $0x50] sm:$0xff] }
   0x4   :  { %302 = vmatpush.msra.mxu0 %v198_v1  ;;  %v212_v7 = vld [vmem:[%s980_s1 + $0xe0] sm:$0xff]  ;;  %v211_v10 = vld [vmem:[%s980_s1 + $0xd8] sm:$0xff]  ;;  %v210_v13 = vld [vmem:[%s980_s1 + $0xd0] sm:$0xff] }
   0x5   :  { %322 = vmatpush.msra.mxu1 %v214_v3  ;;  %v231_v12 = vld [vmem:[%s980_s1 + $0x178] sm:$0xff]  ;;  %v230_v14 = vld [vmem:[%s980_s1 + $0x170] sm:$0xff]  ;;  %v229_v16 = vld [vmem:[%s980_s1 + $0x168] sm:$0xff] }
   0x6   :  { %303 = vmatpush.msra.mxu0 %v197_v4  ;;  %341 = vmatpush.msra.mxu2 %v231_v12  ;;  %v247_v15 = vld [vmem:[%s980_s1 + $0x1f8] sm:$0xff]  ;;  %v246_v17 = vld [vmem:[%s980_s1 + $0x1f0] sm:$0xff]  ;;  %v193_v18 = vld [vmem:[%s980_s1 + $0x48] sm:$0xff] }
   0x7   :  { %323 = vmatpush.msra.mxu1 %v213_v5  ;;  %v209_v19 = vld [vmem:[%s980_s1 + $0xc8] sm:$0xff]  ;;  %361 = vmatpush.msra.mxu3 %v247_v15  ;;  %v228_v20 = vld [vmem:[%s980_s1 + $0x160] sm:$0xff]  ;;  %v227_v24 = vld [vmem:[%s980_s1 + $0x158] sm:$0xff] }
   0x8   :  { %304 = vmatpush.msra.mxu0 %v196_v6  ;;  %342 = vmatpush.msra.mxu2 %v230_v14  ;;  %v245_v21 = vld [vmem:[%s980_s1 + $0x1e8] sm:$0xff]  ;;  %v192_v22 = vld [vmem:[%s980_s1 + $0x40] sm:$0xff]  ;;  %v191_v26 = vld [vmem:[%s980_s1 + $0x38] sm:$0xff] }
   0x9   :  { %324 = vmatpush.msra.mxu1 %v212_v7  ;;  %v208_v23 = vld [vmem:[%s980_s1 + $0xc0] sm:$0xff]  ;;  %362 = vmatpush.msra.mxu3 %v246_v17  ;;  %v207_v27 = vld [vmem:[%s980_s1 + $0xb8] sm:$0xff]  ;;  %v226_v28 = vld [vmem:[%s980_s1 + $0x150] sm:$0xff] }
   0xa   :  { %305 = vmatpush.msra.mxu0 %v195_v9  ;;  %343 = vmatpush.msra.mxu2 %v229_v16  ;;  %v244_v25 = vld [vmem:[%s980_s1 + $0x1e0] sm:$0xff]  ;;  %v243_v29 = vld [vmem:[%s980_s1 + $0x1d8] sm:$0xff]  ;;  %v190_v30 = vld [vmem:[%s980_s1 + $0x30] sm:$0xff] }
   0xb   :  { %325 = vmatpush.msra.mxu1 %v211_v10  ;;  %363 = vmatpush.msra.mxu3 %v245_v21  ;;  %v206_v31 = vld [vmem:[%s980_s1 + $0xb0] sm:$0xff]  ;;  %v225_v32 = vld [vmem:[%s980_s1 + $0x148] sm:$0xff]  ;;  %v224_v36 = vld [vmem:[%s980_s1 + $0x140] sm:$0xff] }
   0xc   :  { %306 = vmatpush.msra.mxu0 %v194_v11  ;;  %344 = vmatpush.msra.mxu2 %v228_v20  ;;  %v242_v33 = vld [vmem:[%s980_s1 + $0x1d0] sm:$0xff]  ;;  %v189_v34 = vld [vmem:[%s980_s1 + $0x28] sm:$0xff]  ;;  %v188_v38 = vld [vmem:[%s980_s1 + $0x20] sm:$0xff] }
   0xd   :  { %326 = vmatpush.msra.mxu1 %v210_v13  ;;  %364 = vmatpush.msra.mxu3 %v244_v25  ;;  %v205_v35 = vld [vmem:[%s980_s1 + $0xa8] sm:$0xff]  ;;  %v204_v39 = vld [vmem:[%s980_s1 + $0xa0] sm:$0xff]  ;;  %v223_v40 = vld [vmem:[%s980_s1 + $0x138] sm:$0xff] }
   0xe   :  { %307 = vmatpush.msra.mxu0 %v193_v18  ;;  %345 = vmatpush.msra.mxu2 %v227_v24  ;;  %v241_v37 = vld [vmem:[%s980_s1 + $0x1c8] sm:$0xff]  ;;  %v240_v41 = vld [vmem:[%s980_s1 + $0x1c0] sm:$0xff]  ;;  %v187_v42 = vld [vmem:[%s980_s1 + $0x18] sm:$0xff] }
   0xf   :  { %327 = vmatpush.msra.mxu1 %v209_v19  ;;  %365 = vmatpush.msra.mxu3 %v243_v29  ;;  %v203_v43 = vld [vmem:[%s980_s1 + $0x98] sm:$0xff]  ;;  %v222_v44 = vld [vmem:[%s980_s1 + $0x130] sm:$0xff]  ;;  %v185_v48 = vld [vmem:[%s980_s1 + $0x8] sm:$0xff] }
  0x10   :  { %308 = vmatpush.msra.mxu0 %v192_v22  ;;  %346 = vmatpush.msra.mxu2 %v226_v28  ;;  %v239_v45 = vld [vmem:[%s980_s1 + $0x1b8] sm:$0xff]  ;;  %v186_v46 = vld [vmem:[%s980_s1 + $0x10] sm:$0xff]  ;;  %v221_v49 = vld [vmem:[%s980_s1 + $0x128] sm:$0xff] }
  0x11   :  { %328 = vmatpush.msra.mxu1 %v208_v23  ;;  %366 = vmatpush.msra.mxu3 %v242_v33  ;;  %v202_v47 = vld [vmem:[%s980_s1 + $0x90] sm:$0xff]  ;;  %v184_v51 = vld [vmem:[%s980_s1] sm:$0xff]  ;;  %v201_v52 = vld [vmem:[%s980_s1 + $0x88] sm:$0xff] }
  0x12   :  { %309 = vmatpush.msra.mxu0 %v191_v26  ;;  %347 = vmatpush.msra.mxu2 %v225_v32  ;;  %v238_v50 = vld [vmem:[%s980_s1 + $0x1b0] sm:$0xff]  ;;  %v200_v53 = vld [vmem:[%s980_s1 + $0x80] sm:$0xff]  ;;  %v263_v54 = vld [vmem:[%s980_s1 + $0x278] sm:$0xff] }
  0x13   :  { %329 = vmatpush.msra.mxu1 %v207_v27  ;;  %367 = vmatpush.msra.mxu3 %v241_v37  ;;  %v279_v55 = vld [vmem:[%s980_s1 + $0x2f8] sm:$0xff]  ;;  %v220_v56 = vld [vmem:[%s980_s1 + $0x120] sm:$0xff]  ;;  %v237_v57 = vld [vmem:[%s980_s1 + $0x1a8] sm:$0xff] }
  0x14   :  { %310 = vmatpush.msra.mxu0 %v190_v30  ;;  %348 = vmatpush.msra.mxu2 %v224_v36  ;;  %v219_v58 = vld [vmem:[%s980_s1 + $0x118] sm:$0xff]  ;;  %v36_v59 = vld [vmem:[%s979_s0] sm:$0xff]  ;;  %v37_v60 = vld [vmem:[%s979_s0 + $0x8] sm:$0xff] }
  0x15   :  { %330 = vmatpush.msra.mxu1 %v206_v31  ;;  %368 = vmatpush.msra.mxu3 %v240_v41  ;;  %v38_v61 = vld [vmem:[%s979_s0 + $0x10] sm:$0xff]  ;;  %v39_v62 = vld [vmem:[%s979_s0 + $0x18] sm:$0xff]  ;;  %v50_v1 = vrot.slane %v36_v59, 4  ;;  %v56_v2 = vrot.slane %v37_v60, 4  ;;  %v236_v4 = vld [vmem:[%s980_s1 + $0x1a0] sm:$0xff] }
  0x16   :  { %311 = vmatpush.msra.mxu0 %v189_v34  ;;  %349 = vmatpush.msra.mxu2 %v223_v40  ;;  %v42_v63 = vld [vmem:[%s979_s0 + $0x30] sm:$0xff]  ;;  %v43_v0 = vld [vmem:[%s979_s0 + $0x38] sm:$0xff]  ;;  %v62_v3 = vrot.slane %v38_v61, 4  ;;  %v44_v5 = vld [vmem:[%s979_s0 + $0x40] sm:$0xff]  ;;  %v68_v7 = vrot.slane %v39_v62, 4 }
  0x17   :  { %331 = vmatpush.msra.mxu1 %v205_v35  ;;  %369 = vmatpush.msra.mxu3 %v239_v45  ;;  %v45_v6 = vld [vmem:[%s979_s0 + $0x48] sm:$0xff]  ;;  %v86_v8 = vrot.slane %v42_v63, 4  ;;  %v92_v9 = vrot.slane %v43_v0, 4  ;;  %v262_v10 = vld [vmem:[%s980_s1 + $0x270] sm:$0xff]  ;;  %v51_v12 = vadd.f32 %v50_v1, %v36_v59  ;;  %v57_v13 = vadd.f32 %v56_v2, %v37_v60  ;;  %v235_v17 = vld [vmem:[%s980_s1 + $0x198] sm:$0xff] }
  0x18   :  { %312 = vmatpush.msra.mxu0 %v188_v38  ;;  %350 = vmatpush.msra.mxu2 %v222_v44  ;;  %v278_v11 = vld [vmem:[%s980_s1 + $0x2f0] sm:$0xff]  ;;  %v63_v14 = vadd.f32 %v62_v3, %v38_v61  ;;  %v98_v15 = vrot.slane %v44_v5, 4  ;;  %v69_v18 = vadd.f32 %v68_v7, %v39_v62  ;;  %v104_v21 = vrot.slane %v45_v6, 4  ;;  %v261_v22 = vld [vmem:[%s980_s1 + $0x268] sm:$0xff]  ;;  %v260_v28 = vld [vmem:[%s980_s1 + $0x260] sm:$0xff] }
  0x19   :  { %332 = vmatpush.msra.mxu1 %v204_v39  ;;  %370 = vmatpush.msra.mxu3 %v238_v50  ;;  %v218_v16 = vld [vmem:[%s980_s1 + $0x110] sm:$0xff]  ;;  %v87_v19 = vadd.f32 %v86_v8, %v42_v63  ;;  %v93_v20 = vadd.f32 %v92_v9, %v43_v0  ;;  %v277_v23 = vld [vmem:[%s980_s1 + $0x2e8] sm:$0xff]  ;;  %v52_v24 = vrot.slane %v51_v12, 2  ;;  %v58_v25 = vrot.slane %v57_v13, 2  ;;  %v259_v35 = vld [vmem:[%s980_s1 + $0x258] sm:$0xff] }
  0x1a   :  { %313 = vmatpush.msra.mxu0 %v187_v42  ;;  %351 = vmatpush.msra.mxu2 %v221_v49  ;;  %v64_v26 = vrot.slane %v63_v14, 2  ;;  %v99_v27 = vadd.f32 %v98_v15, %v44_v5  ;;  %v217_v29 = vld [vmem:[%s980_s1 + $0x108] sm:$0xff]  ;;  %v234_v30 = vld [vmem:[%s980_s1 + $0x190] sm:$0xff]  ;;  %v70_v31 = vrot.slane %v69_v18, 2  ;;  %v105_v34 = vadd.f32 %v104_v21, %v45_v6  ;;  %v276_v36 = vld [vmem:[%s980_s1 + $0x2e0] sm:$0xff] }
  0x1b   :  { %333 = vmatpush.msra.mxu1 %v203_v43  ;;  %371 = vmatpush.msra.mxu3 %v237_v57  ;;  %v88_v32 = vrot.slane %v87_v19, 2  ;;  %v94_v33 = vrot.slane %v93_v20, 2  ;;  %v275_v37 = vld [vmem:[%s980_s1 + $0x2d8] sm:$0xff]  ;;  %v53_v38 = vadd.f32 %v52_v24, %v51_v12  ;;  %v59_v39 = vadd.f32 %v58_v25, %v57_v13  ;;  %v216_v42 = vld [vmem:[%s980_s1 + $0x100] sm:$0xff]  ;;  %v233_v43 = vld [vmem:[%s980_s1 + $0x188] sm:$0xff] }
  0x1c   :  { %314 = vmatpush.msra.mxu0 %v186_v46  ;;  %352 = vmatpush.msra.mxu2 %v220_v56  ;;  %v65_v40 = vadd.f32 %v64_v26, %v63_v14  ;;  %v100_v41 = vrot.slane %v99_v27, 2  ;;  %v71_v44 = vadd.f32 %v70_v31, %v69_v18  ;;  %v274_v59 = vld [vmem:[%s980_s1 + $0x2d0] sm:$0xff]  ;;  %v41_v0 = vld [vmem:[%s979_s0 + $0x28] sm:$0xff] }
  0x1d   :  { %334 = vmatpush.msra.mxu1 %v202_v47  ;;  %372 = vmatpush.msra.mxu3 %v236_v4  ;;  %v89_v45 = vadd.f32 %v88_v32, %v87_v19  ;;  %v95_v46 = vadd.f32 %v94_v33, %v93_v20  ;;  %v106_v47 = vrot.slane %v105_v34, 2  ;;  %v54_v49 = vrot.slane %v53_v38, 1 }
  0x1e   :  { %315 = vmatpush.msra.mxu0 %v185_v48  ;;  %353 = vmatpush.msra.mxu2 %v219_v58  ;;  %v258_v48 = vld [vmem:[%s980_s1 + $0x250] sm:$0xff]  ;;  %v60_v50 = vrot.slane %v59_v39, 1  ;;  %v232_v58 = vld [vmem:[%s980_s1 + $0x180] sm:$0xff] }
  0x1f   :  { %335 = vmatpush.msra.mxu1 %v201_v52  ;;  %373 = vmatpush.msra.mxu3 %v235_v17  ;;  %v101_v52 = vadd.f32 %v100_v41, %v99_v27  ;;  %v96_v56 = vrot.slane %v95_v46, 1  ;;  %v107_v57 = vadd.f32 %v106_v47, %v105_v34  ;;  %v55_v60 = vadd.f32 %v54_v49, %v53_v38 }
  0x20   :  { %316 = vmatpush.msra.mxu0 %v184_v51  ;;  %354 = vmatpush.msra.mxu2 %v218_v16  ;;  %v66_v51 = vrot.slane %v65_v40, 1  ;;  %v61_v61 = vadd.f32 %v60_v50, %v59_v39 }
  0x21   :  { %336 = vmatpush.msra.mxu1 %v200_v53  ;;  %374 = vmatpush.msra.mxu3 %v234_v30  ;;  %v40_v53 = vld [vmem:[%s979_s0 + $0x20] sm:$0xff]  ;;  %v102_v63 = vrot.slane %v101_v52, 1 }
  0x22   :  { %381 = vmatpush.msrb.mxu0 %v263_v54  ;;  %355 = vmatpush.msra.mxu2 %v217_v29  ;;  %v72_v54 = vrot.slane %v71_v44, 1  ;;  %v67_v62 = vadd.f32 %v66_v51, %v65_v40 }
  0x23   :  { %401 = vmatpush.msrb.mxu1 %v279_v55  ;;  %v90_v55 = vrot.slane %v89_v45, 1  ;;  %375 = vmatpush.msra.mxu3 %v233_v43 }
  0x24   :  { %382 = vmatpush.msrb.mxu0 %v262_v10  ;;  %356 = vmatpush.msra.mxu2 %v216_v42 }
  0x25   :  { %402 = vmatpush.msrb.mxu1 %v278_v11 }
  0x26   :  { %383 = vmatpush.msrb.mxu0 %v261_v22 }
  0x27   :  { %403 = vmatpush.msrb.mxu1 %v277_v23 }
  0x28   :  { %384 = vmatpush.msrb.mxu0 %v260_v28 }
  0x29   :  { %404 = vmatpush.msrb.mxu1 %v276_v36 }
  0x2a   :  { %12 = vsyncpa [#allocation4], 0  ;;  %385 = vmatpush.msrb.mxu0 %v259_v35  ;;  %v73_v1 = vadd.f32 %v72_v54, %v71_v44  ;;  %v91_v2 = vadd.f32 %v90_v55, %v89_v45  ;;  %v97_v3 = vadd.f32 %v96_v56, %v95_v46  ;;  %v108_v4 = vrot.slane %v107_v57, 1  ;;  %v46_v5 = vld [vmem:[%s979_s0 + $0x50] sm:$0xff]  ;;  %v257_v6 = vld [vmem:[%s980_s1 + $0x248] sm:$0xff]  ;;  %376 = vmatpush.msra.mxu3 %v232_v58  ;;  %s557_s28 = smov [#allocation3]  }
  0x2b   :  { %405 = vmatpush.msrb.mxu1 %v275_v37  ;;  %v273_v7 = vld [vmem:[%s980_s1 + $0x2c8] sm:$0xff]  ;;  %v103_v8 = vadd.f32 %v102_v63, %v101_v52  ;;  %v134_v9 = vrot.slane %v61_v61, 6  ;;  %v135_v10 = vrot.slane %v67_v62, 4  ;;  %v74_v11 = vrot.slane %v40_v53, 4  ;;  %v47_v15 = vld [vmem:[%s979_s0 + $0x58] sm:$0xff]  ;;  %v256_v17 = vld [vmem:[%s980_s1 + $0x240] sm:$0xff] }
  0x2c   :  { %386 = vmatpush.msrb.mxu0 %v258_v48  ;;  %v109_v12 = vadd.f32 %v108_v4, %v107_v57  ;;  %v136_v13 = vrot.slane %v73_v1, 2  ;;  %v138_v14 = vrot.slane %v97_v3, 6  ;;  %v80_v16 = vrot.slane %v41_v0, 4  ;;  %v272_v18 = vld [vmem:[%s980_s1 + $0x2c0] sm:$0xff]  ;;  %v255_v27 = vld [vmem:[%s980_s1 + $0x238] sm:$0xff]  ;;  %v254_v35 = vld [vmem:[%s980_s1 + $0x230] sm:$0xff] }
  0x2d   :  { %406 = vmatpush.msrb.mxu1 %v274_v59  ;;  %v139_v19 = vrot.slane %v103_v8, 4  ;;  %v143_v20 = vsel %vm142_vm0, %v55_v60, %v134_v9  ;;  %v75_v21 = vadd.f32 %v74_v11, %v40_v53  ;;  %v110_v22 = vrot.slane %v46_v5, 4  ;;  %v271_v28 = vld [vmem:[%s980_s1 + $0x2b8] sm:$0xff]  ;;  %v270_v36 = vld [vmem:[%s980_s1 + $0x2b0] sm:$0xff]  ;;  %v253_v43 = vld [vmem:[%s980_s1 + $0x228] sm:$0xff]  ;;  %s504_s29 = sshll.u32 %s557_s28, 4  ;;  %s505_s29 = int_to_ptr.vmem [resolvable:$true] %s504_s29 }
  0x2e   :  { %387 = vmatpush.msrb.mxu0 %v257_v6  ;;  %v140_v23 = vrot.slane %v109_v12, 2  ;;  %v145_v24 = vsel %vm144_vm1, %v135_v10, %v136_v13  ;;  %v149_v25 = vsel %vm142_vm0, %v91_v2, %v138_v14  ;;  %v81_v26 = vadd.f32 %v80_v16, %v41_v0  ;;  %v269_v44 = vld [vmem:[%s980_s1 + $0x2a8] sm:$0xff]  ;;  %v252_v50 = vld [vmem:[%s980_s1 + $0x220] sm:$0xff]  ;;  %v251_v58 = vld [vmem:[%s980_s1 + $0x218] sm:$0xff] }
  0x2f   :  { %407 = vmatpush.msrb.mxu1 %v273_v7  ;;  %v76_v29 = vrot.slane %v75_v21, 2  ;;  %v111_v30 = vadd.f32 %v110_v22, %v46_v5  ;;  %v116_v31 = vrot.slane %v47_v15, 4  ;;  %v147_v32 = vsel %vm146_vm2, %v143_v20, %v145_v24  ;;  %v268_v51 = vld [vmem:[%s980_s1 + $0x2a0] sm:$0xff]  ;;  %v267_v59 = vld [vmem:[%s980_s1 + $0x298] sm:$0xff]  ;;  %v250_v61 = vld [vmem:[%s980_s1 + $0x210] sm:$0xff] }
  0x30   :  { %388 = vmatpush.msrb.mxu0 %v256_v17  ;;  %v150_v33 = vsel %vm144_vm1, %v139_v19, %v140_v23  ;;  %vm158_vm3 = vcmask 1041409   ;;  %v82_v34 = vrot.slane %v81_v26, 2  ;;  %vm160_vm4 = vcmask 1043459   ;;  %v266_v62 = vld [vmem:[%s980_s1 + $0x290] sm:$0xff]  ;;  %v249_v3 = vld [vmem:[%s980_s1 + $0x208] sm:$0xff]  ;;  %v248_v6 = vld [vmem:[%s980_s1 + $0x200] sm:$0xff] }
  0x31   :  { %408 = vmatpush.msrb.mxu1 %v272_v18  ;;  %v151_v37 = vsel %vm146_vm2, %v149_v25, %v150_v33  ;;  %v77_v38 = vadd.f32 %v76_v29, %v75_v21  ;;  %v112_v39 = vrot.slane %v111_v30, 2  ;;  %v117_v40 = vadd.f32 %v116_v31, %v47_v15  ;;  %v265_v4 = vld [vmem:[%s980_s1 + $0x288] sm:$0xff]  ;;  %v264_v9 = vld [vmem:[%s980_s1 + $0x280] sm:$0xff]  ;;  %v49_v12 = vld [vmem:[#allocation2 + $0x8] sm:$0xf]  ;;  %s506_s1 = sshll.u32 %s986_s7, 4  ;;  %s507_s1 = int_to_ptr.hbm [resolvable:$true] %s506_s1 }
  0x32   :  { %389 = vmatpush.msrb.mxu0 %v255_v27  ;;  %v157_v41 = vrot.slane %v151_v37, 7  ;;  %v83_v42 = vadd.f32 %v82_v34, %v81_v26  ;;  %vm162_vm5 = vcmask 1045509   ;;  %vm164_vm6 = vcmask 1047559   ;;  %v519_v24 = vld [vmem:[%s981_s2] ss:$0 sm:$0xff] }
  0x33   :  { %409 = vmatpush.msrb.mxu1 %v271_v28  ;;  %v113_v45 = vadd.f32 %v112_v39, %v111_v30  ;;  %v118_v46 = vrot.slane %v117_v40, 2  ;;  %v78_v52 = vrot.slane %v77_v38, 1  ;;  %vm421_vm7 = vcmask 517120  }
  0x34   :  { %390 = vmatpush.msrb.mxu0 %v254_v35  ;;  %v159_v47 = vsel %vm158_vm3, %v157_v41, %v147_v32  ;;  %v84_v48 = vrot.slane %v83_v42, 1  ;;  %vm474_vm12 = vcmask 523264  }
  0x35   :  { %410 = vmatpush.msrb.mxu1 %v270_v36  ;;  %v161_v49 = vsel %vm160_vm4, %v157_v41, %v159_v47  ;;  %v114_v53 = vrot.slane %v113_v45, 1  ;;  %v119_v54 = vadd.f32 %v118_v46, %v117_v40  ;;  %v79_v63 = vadd.f32 %v78_v52, %v77_v38  ;;  %v467_v52 = vld [vmem:[%s984_s5 + $0x28] sm:$0xff] }
  0x36   :  { %391 = vmatpush.msrb.mxu0 %v253_v43  ;;  %v163_v55 = vsel %vm162_vm5, %v157_v41, %v161_v49  ;;  %v85_v56 = vadd.f32 %v84_v48, %v83_v42  ;;  %v556_v38 = vmov 64.0  }
  0x37   :  { %411 = vmatpush.msrb.mxu1 %v269_v44  ;;  %v165_v57 = vsel %vm164_vm6, %v157_v41, %v163_v55  ;;  %v120_v60 = vrot.slane %v119_v54, 1  ;;  %v115_v0 = vadd.f32 %v114_v53, %v113_v45  ;;  %523 = vrcp.f32 %v556_v38  ;;  %v466_v53 = vld [vmem:[%s984_s5 + $0x20] sm:$0xff]  ;;  %v464_v55 = vld [vmem:[%s984_s5 + $0x10] sm:$0xff] }
  0x38   :  { %392 = vmatpush.msrb.mxu0 %v252_v50  ;;  %v137_v2 = vrot.slane %v85_v56, 6  ;;  %286 = vst [vmem:[#allocation1] ss:$4 sm:$0xff] %v165_v57  ;;  %v469_v50 = vld [vmem:[%s984_s5 + $0x38] sm:$0xff]  ;;  %v463_v56 = vld [vmem:[%s984_s5 + $0x8] sm:$0xff] }
  0x39   :  { %412 = vmatpush.msrb.mxu1 %v268_v51  ;;  %v121_v1 = vadd.f32 %v120_v60, %v119_v54  ;;  %486 = vmatpush.msrb.mxu2 %v469_v50  ;;  %v468_v51 = vld [vmem:[%s984_s5 + $0x30] sm:$0xff]  ;;  %v465_v54 = vld [vmem:[%s984_s5 + $0x18] sm:$0xff] }
  0x3a   :  { %393 = vmatpush.msrb.mxu0 %v251_v58  ;;  %v148_v7 = vsel %vm142_vm0, %v79_v63, %v137_v2  ;;  %v462_v58 = vld [vmem:[%s984_s5] sm:$0xff] }
  0x3b   :  { %413 = vmatpush.msrb.mxu1 %v267_v59  ;;  %v141_v5 = vrot.slane %v121_v1, 6  ;;  %487 = vmatpush.msrb.mxu2 %v468_v51 }
  0x3c   :  { %394 = vmatpush.msrb.mxu0 %v250_v61 }
  0x3d   :  { %414 = vmatpush.msrb.mxu1 %v266_v62  ;;  %v152_v8 = vsel %vm142_vm0, %v115_v0, %v141_v5  ;;  %v524_v39 = vpop.eup %523  ;;  %488 = vmatpush.msrb.mxu2 %v467_v52  ;;  %v521_v5 = vld [vmem:[%s983_s4] ss:$0 sm:$0xff] }
  0x3e   :  { %395 = vmatpush.msrb.mxu0 %v249_v3  ;;  %v168_v10 = vrot.slane %v152_v8, 7  ;;  %v426_v40 = vmul.f32 64.0, %v524_v39  ;;  %vm430_vm8 = vweird.f32 %v524_v39  ;;  %v520_v3 = vld [vmem:[%s982_s3] ss:$0 sm:$0xff] }
  0x3f   :  { %415 = vmatpush.msrb.mxu1 %v265_v4  ;;  %v291_v14 = vld.sshfl [vmem:[#allocation1 + $0x10] sm:$0xff pattern:$0x73625140]  ;;  %v289_v15 = vld.sshfl [vmem:[#allocation1] sm:$0xff pattern:$0x73625140]  ;;  %489 = vmatpush.msrb.mxu2 %v466_v53 }
  0x40   :  { %396 = vmatpush.msrb.mxu0 %v248_v6  ;;  %v169_v11 = vsel %vm158_vm3, %v168_v10, %v148_v7  ;;  %357 = vmatmul.f32.vlgmr.msra.gmra.mxu2 %v291_v14  ;;  %v292_v17 = vld.sshfl [vmem:[#allocation1 + $0x18] sm:$0xff pattern:$0x73625140]  ;;  %v290_v18 = vld.sshfl [vmem:[#allocation1 + $0x8] sm:$0xff pattern:$0x73625140] }
  0x41   :  { %416 = vmatpush.msrb.mxu1 %v264_v9  ;;  %v170_v13 = vsel %vm160_vm4, %v168_v10, %v169_v11  ;;  %317 = vmatmul.f32.vlgmr.msra.gmra.mxu0 %v289_v15  ;;  %v427_v41 = vsub.f32 1.0, %v426_v40 }
  0x42   :  { %v171_v16 = vsel %vm162_vm5, %v168_v10, %v170_v13  ;;  %377 = vmatmul.f32.vlgmr.msra.gmra.mxu3 %v292_v17  ;;  %337 = vmatmul.f32.vlgmr.msra.gmra.mxu1 %v290_v18 }
  0x43   :  { %v172_v19 = vsel %vm164_vm6, %v168_v10, %v171_v16  ;;  %v428_v42 = vmul.f32 %v524_v39, %v427_v41  ;;  %490 = vmatpush.msrb.mxu2 %v465_v54  ;;  %v522_v10 = vld [vmem:[%s985_s6] ss:$0 sm:$0xff] }
  0x44   :  { %v176_v20 = vadd.f32 %v172_v19, %v49_v12 }
  0x45   :  { %v429_v43 = vadd.f32 %v524_v39, %v428_v42  ;;  %491 = vmatpush.msrb.mxu2 %v464_v55 }
  0x46   :  { %178 = vst [vmem:[#allocation2 + $0x8] sm:$0xf] %v176_v20 }
  0x47   :  { %v431_v44 = vsel %vm430_vm8, %v524_v39, %v429_v43  ;;  %492 = vmatpush.msrb.mxu2 %v463_v56 }
  0x49   :  { %493 = vmatpush.msrb.mxu2 %v462_v58 }
  0x4d   :  { %v183_v21 = vld [vmem:[#allocation2 + $0x8] sm:$0xf] }
  0x4e   :  { %288 = vst [vmem:[#allocation1 + $0x20] ss:$4 sm:$0xff] %v183_v21 }
  0x55   :  { %v293_v22 = vld.sshfl [vmem:[#allocation1 + $0x20] sm:$0xff pattern:$0x73625140]  ;;  %v294_v23 = vld.sshfl [vmem:[#allocation1 + $0x28] sm:$0xff pattern:$0x73625140] }
  0x56   :  { %397 = vmatmul.f32.vlgmr.msrb.gmra.mxu0 %v293_v22  ;;  %417 = vmatmul.f32.vlgmr.msrb.gmra.mxu1 %v294_v23 }
  0xbe   :  { %v318_v25 = vpop.f32.mrf.mxu0 }
  0xbf   :  { %v319_v26 = vadd.f32 %v519_v24, %v318_v25  ;;  %v338_v27 = vpop.f32.mrf.mxu1 }
  0xc1   :  { %v339_v28 = vadd.f32 %v338_v27, %v319_v26 }
  0xc3   :  { %v358_v29 = vpop.f32.mrf.mxu2 }
  0xc4   :  { %v359_v30 = vadd.f32 %v358_v29, %v339_v28 }
  0xc5   :  { %v378_v31 = vpop.f32.mrf.mxu3 }
  0xc6   :  { %v379_v32 = vadd.f32 %v378_v31, %v359_v30 }
  0xd3   :  { %v398_v33 = vpop.f32.mrf.mxu0  ;;  %v418_v34 = vpop.f32.mrf.mxu1 }
  0xd4   :  { %v399_v35 = vadd.f32 %v398_v33, %v379_v32 }
  0xd6   :  { %v419_v36 = vadd.f32 %v418_v34, %v399_v35 }
  0xd8   :  { %v422_v37 = vsel %vm421_vm7, %v419_v36, 0.0 }
  0xd9   :  { %423 = vadd.xlane.f32.xlu0 %v422_v37 }
 0x14c   :  { %v424_v45 = vpop.xlane.xlu0 %423 }
 0x14d   :  { %v432_v46 = vmul.f32 %v431_v44, %v424_v45 }
 0x14f   :  { %v433_v47 = vsub.f32 %v419_v36, %v432_v46 }
 0x151   :  { %v434_v48 = vmul.f32 %v433_v47, %v433_v47 }
 0x153   :  { %v435_v49 = vsel %vm421_vm7, %v434_v48, 0.0 }
 0x154   :  { %436 = vadd.xlane.f32.xlu0 %v435_v49 }
 0x1c7   :  { %v437_v57 = vpop.xlane.xlu0 %436 }
 0x1c8   :  { %v438_v59 = vmul.f32 %v437_v57, %v431_v44 }
 0x1ca   :  { %v439_v60 = vadd.f32 1e-05, %v438_v59 }
 0x1cc   :  { %525 = vrsqrt.f32 %v439_v60  ;;  %vm446_vm10 = vweird.f32 %v439_v60 }
 0x1d2   :  { %v526_v61 = vpop.eup %525 }
 0x1d3   :  { %v441_v62 = vmul.f32 %v526_v61, %v439_v60  ;;  %vm447_vm9 = vweird.f32 %v526_v61 }
 0x1d4   :  { %vm448_vm11 = vmor %vm446_vm10, %vm447_vm9 }
 0x1d5   :  { %v442_v63 = vmul.f32 %v526_v61, %v441_v62 }
 0x1d7   :  { %v443_v0 = vmul.f32 0.5, %v442_v63 }
 0x1d9   :  { %v444_v1 = vsub.f32 1.5, %v443_v0 }
 0x1db   :  { %v445_v2 = vmul.f32 %v526_v61, %v444_v1 }
 0x1dd   :  { %v449_v4 = vsel %vm448_vm11, %v526_v61, %v445_v2 }
 0x1de   :  { %v450_v6 = vmul.f32 %v449_v4, %v433_v47 }
 0x1e0   :  { %v455_v7 = vmul.f32 %v520_v3, %v450_v6 }
 0x1e2   :  { %v460_v8 = vadd.f32 %v521_v5, %v455_v7 }
 0x1e4   :  { %527 = vtanh.f32 %v460_v8 }
 0x1ea   :  { %v528_v9 = vpop.eup %527 }
 0x1eb   :  { %515 = vmatmul.msk.f32.vlgmr.msrb.gmra.mxu2 %vm474_vm12, %v528_v9 }
 0x26e   :  { %v495_v11 = vpop.f32.mrf.mxu2 }
 0x26f   :  { %v496_v12 = vadd.f32 %v522_v10, %v495_v11 }
 0x271   :  { %498 = vst [vmem:[#allocation3] sm:$0x3] %v496_v12 }
 0x272   :  { %509 = dma.vmem_to_hbm [thread:$0]  %s505_s29, 32, %s507_s1, [#allocation4]  }
 0x273   :  { %553 = dma.done.wait [#allocation4], 32  }
 0x274   :  { %554 = vsyncadd [#allocation4], 4294967264 }
 0x275   :  { %514 = vsyncpa [#allocation4], 1 }

</bundles_post_ra>
